<compile_context>
chip_gen: v6e
topology: v6e:2x2x1
jax: 0.10.0
libtpu: 0.0.40
codegen_flags: <defaults>
</compile_context>

<pallas_src>
import jax
import jax.numpy as jnp
from jax.experimental import pallas as pl
from jax.experimental.pallas import tpu as pltpu

_TARGET_ROWS = 512    # target sublane extent of a block (multiple of 8)
_TARGET_COLS = 1024   # target lane extent of a block (multiple of 128, lane-dense vst)


def _pick_block(total, target, align):
    """Largest multiple of `align` that divides `total` and is <= target (else total)."""
    if total <= target:
        return total
    best = align
    b = align
    while b <= target:
        if total % b == 0:
            best = b
        b += align
    return best


def _tile_loss(fp_ref, y_pred_ref, y_true_ref):
    """Per-tile unbiased noisy-label loss (soft-margin base loss), y in {-1,+1}.

    Reference:  [(1-fp[-y])*l(p,y) - fp[y]*l(p,-y)] / (1 - fp[-1] - fp[1])
    Using l(p,-y) = y*p + l(p,y) and fp[y] = c0 + y*c1 (y = +-1), this collapses to
        loss = l(p,y) - a0*(y*p) - a1*p
    with scalars a0 = c0/denom, a1 = c1/denom, c0 = (fp[1]+fp[-1])/2, c1 = (fp[1]-fp[-1])/2.
    """
    fp_pos = fp_ref[1]   # P(flip | Y = +1)  == flip_prob[1]
    fp_neg = fp_ref[2]   # P(flip | Y = -1)  == flip_prob[-1]

    inv_denom = 1.0 / (1.0 - fp_neg - fp_pos)      # scalar, once per grid step
    a0 = 0.5 * (fp_pos + fp_neg) * inv_denom
    a1 = 0.5 * (fp_pos - fp_neg) * inv_denom

    p = y_pred_ref[...]
    y = y_true_ref[...]
    yp = y * p
    l_y = jnp.logaddexp(0.0, -yp)                  # softplus(-y*p): single exp + log1p
    return l_y - a0 * yp - a1 * p


def _nagarajan_loss_kernel(fp_ref, y_pred_ref, y_true_ref, out_ref):
    out_ref[...] = _tile_loss(fp_ref, y_pred_ref, y_true_ref)


def _nagarajan_loss_reduce_kernel(fp_ref, y_pred_ref, y_true_ref, out_ref):
    i = pl.program_id(0)
    j = pl.program_id(1)

    @pl.when(jnp.logical_and(i == 0, j == 0))
    def _():
        out_ref[...] = jnp.zeros_like(out_ref)

    tile = _tile_loss(fp_ref, y_pred_ref, y_true_ref)
    out_ref[...] = out_ref[...] + jnp.sum(tile)


def nagarajan_loss(y_pred, y_true, flip_prob=None, reduction="none",
                   *, block_rows=None, block_cols=None):
    """Pallas implementation of NagarajanLoss.forward (soft-margin base loss)."""
    if flip_prob is None:
        flip_prob = jnp.zeros((3,), jnp.float32)
    flip_prob = jnp.asarray(flip_prob, jnp.float32)
    if flip_prob.ndim > 1:
        raise ValueError("flip_prob must be a 1D tensor.")
    if flip_prob.shape[0] == 2:
        # mirror the PyTorch module: torch.cat((flip_prob, flip_prob[0]))
        flip_prob = jnp.concatenate([flip_prob, flip_prob[0:1]])

    y_pred = jnp.asarray(y_pred, jnp.float32)
    y_true = jnp.asarray(y_true, jnp.float32)
    assert y_pred.shape == y_true.shape and y_pred.ndim == 2
    B, D = y_pred.shape
    assert B % 8 == 0 and D % 128 == 0

    tm = block_rows if block_rows is not None else _pick_block(B, _TARGET_ROWS, 8)
    tn = block_cols if block_cols is not None else _pick_block(D, _TARGET_COLS, 128)
    assert B % tm == 0 and D % tn == 0
    # Keep >=2 grid steps when possible so both v7x TensorCores get work
    # (the elementwise path marks both grid axes "parallel").
    if block_rows is None and (B // tm) * (D // tn) == 1 and B >= 16:
        tm = _pick_block(B, B // 2, 8)
    grid = (B // tm, D // tn)

    fp_spec = pl.BlockSpec(memory_space=pltpu.MemorySpace.SMEM)   # (3,) scalar table
    tile_spec = pl.BlockSpec((tm, tn), lambda i, j: (i, j))

    if reduction == "none":
        return pl.pallas_call(
            _nagarajan_loss_kernel,
            out_shape=jax.ShapeDtypeStruct((B, D), jnp.float32),
            grid=grid,
            in_specs=[fp_spec, tile_spec, tile_spec],
            out_specs=pl.BlockSpec((tm, tn), lambda i, j: (i, j)),
            compiler_params=pltpu.CompilerParams(
                dimension_semantics=("parallel", "parallel")),
        )(flip_prob, y_pred, y_true)

    if reduction not in ("mean", "sum"):
        raise ValueError(f"unknown reduction: {reduction}")

    # Fused reduction: (1,1) scalar output stays resident across the whole grid
    # (both axes are accumulation axes -> "arbitrary").
    total = pl.pallas_call(
        _nagarajan_loss_reduce_kernel,
        out_shape=jax.ShapeDtypeStruct((1, 1), jnp.float32),
        grid=grid,
        in_specs=[fp_spec, tile_spec, tile_spec],
        out_specs=pl.BlockSpec((1, 1), lambda i, j: (0, 0)),
        compiler_params=pltpu.CompilerParams(
            dimension_semantics=("arbitrary", "arbitrary")),
    )(flip_prob, y_pred, y_true)[0, 0]

    if reduction == "mean":
        return total / (B * D)
    return total


def _reference(y_pred, y_true, flip_prob, reduction="none"):
    """Pure-JAX reference mirroring the PyTorch forward (modulo-3 negative indexing)."""
    fp = jnp.asarray(flip_prob, jnp.float32)
    base = lambda p, y: jnp.logaddexp(0.0, -y * p)
    idx_neg_y = (-y_true.astype(jnp.int32)) % 3
    idx_y = (y_true.astype(jnp.int32)) % 3
    loss = (1.0 - fp[idx_neg_y]) * base(y_pred, y_true) \
        - fp[idx_y] * base(y_pred, -y_true)
    loss = loss / (1.0 - fp[-1] - fp[1])
    if reduction == "mean":
        return jnp.mean(loss)
    if reduction == "sum":
        return jnp.sum(loss)
    return loss


if __name__ == "__main__":
    key = jax.random.PRNGKey(0)
    k1, k2, k3, k4 = jax.random.split(key, 4)

    # deterministic flip probabilities: [unused, P(flip|Y=+1), P(flip|Y=-1)]
    flip_prob = jnp.array([0.0, 0.2, 0.3], dtype=jnp.float32)

    # --- small single-block case -------------------------------------------
    B, D = 8, 128
    y_pred = jax.random.normal(k1, (B, D), dtype=jnp.float32)
    y_true = jnp.where(jax.random.normal(k2, (B, D)) >= 0.0, 1.0, -1.0).astype(jnp.float32)

    loss = nagarajan_loss(y_pred, y_true, flip_prob, reduction="none")
    jax.block_until_ready(loss)
    assert loss.shape == (B, D)
    assert jnp.allclose(loss, _reference(y_pred, y_true, flip_prob, "none"),
                        atol=1e-5, rtol=1e-5)

    loss_mean = nagarajan_loss(y_pred, y_true, flip_prob, reduction="mean")
    jax.block_until_ready(loss_mean)
    assert jnp.allclose(loss_mean, _reference(y_pred, y_true, flip_prob, "mean"),
                        atol=1e-5, rtol=1e-4)

    loss_sum = nagarajan_loss(y_pred, y_true, flip_prob, reduction="sum")
    jax.block_until_ready(loss_sum)
    assert jnp.allclose(loss_sum, _reference(y_pred, y_true, flip_prob, "sum"),
                        atol=1e-3, rtol=1e-4)

    # --- multi-block case (forced small blocks to exercise the 2-D grid) ----
    B2, D2 = 16, 256
    y_pred2 = jax.random.normal(k3, (B2, D2), dtype=jnp.float32)
    y_true2 = jnp.where(jax.random.normal(k4, (B2, D2)) >= 0.0, 1.0, -1.0).astype(jnp.float32)

    loss2 = nagarajan_loss(y_pred2, y_true2, flip_prob, reduction="none",
                           block_rows=8, block_cols=128)
    jax.block_until_ready(loss2)
    assert jnp.allclose(loss2, _reference(y_pred2, y_true2, flip_prob, "none"),
                        atol=1e-5, rtol=1e-5)

    sum2 = nagarajan_loss(y_pred2, y_true2, flip_prob, reduction="sum",
                          block_rows=8, block_cols=128)
    jax.block_until_ready(sum2)
    assert jnp.allclose(sum2, _reference(y_pred2, y_true2, flip_prob, "sum"),
                        atol=1e-3, rtol=1e-4)

    print("KERNEL_OK")
</pallas_src>

<mosaic_0001>
module attributes {stable_mosaic.version = 11 : i64} {
  func.func @_nagarajan_loss_kernel(%arg0: i32, %arg1: i32, %arg2: memref<3xf32, #tpu.memory_space<smem>>, %arg3: memref<8x128xf32, #tpu.memory_space<vmem>>, %arg4: memref<8x128xf32, #tpu.memory_space<vmem>>, %arg5: memref<8x128xf32, #tpu.memory_space<vmem>>) attributes {dimension_semantics = [#tpu.dimension_semantics<parallel>, #tpu.dimension_semantics<parallel>], iteration_bounds = array<i64: 1, 1>, scalar_prefetch = 0 : i64, scratch_operands = 0 : i64, tpu.core_type = #tpu.core_type<tc>, window_params = [{transform_indices = @transform_0, window_bounds = array<i64: 3>}, {transform_indices = @transform_1, window_bounds = array<i64: 8, 128>}, {transform_indices = @transform_2, window_bounds = array<i64: 8, 128>}, {transform_indices = @transform_3, window_bounds = array<i64: 8, 128>}]} {
    %c1 = arith.constant 1 : index
    %0 = memref.load %arg2[%c1] : memref<3xf32, #tpu.memory_space<smem>>
    %c2 = arith.constant 2 : index
    %1 = memref.load %arg2[%c2] : memref<3xf32, #tpu.memory_space<smem>>
    %cst = arith.constant 1.000000e+00 : f32
    %2 = arith.subf %cst, %1 : f32
    %3 = arith.subf %2, %0 : f32
    %cst_0 = arith.constant 1.000000e+00 : f32
    %4 = arith.divf %cst_0, %3 : f32
    %5 = arith.addf %0, %1 : f32
    %cst_1 = arith.constant 5.000000e-01 : f32
    %6 = arith.mulf %cst_1, %5 : f32
    %7 = arith.mulf %6, %4 : f32
    %8 = arith.subf %0, %1 : f32
    %cst_2 = arith.constant 5.000000e-01 : f32
    %9 = arith.mulf %cst_2, %8 : f32
    %10 = arith.mulf %9, %4 : f32
    %c0 = arith.constant 0 : index
    %c0_3 = arith.constant 0 : index
    %11 = vector.load %arg3[%c0, %c0_3] : memref<8x128xf32, #tpu.memory_space<vmem>>, vector<8x128xf32>
    %c0_4 = arith.constant 0 : index
    %c0_5 = arith.constant 0 : index
    %12 = vector.load %arg4[%c0_4, %c0_5] : memref<8x128xf32, #tpu.memory_space<vmem>>, vector<8x128xf32>
    %13 = arith.mulf %12, %11 : vector<8x128xf32>
    %cst_6 = arith.constant 0.000000e+00 : f32
    %14 = vector.broadcast %cst_6 : f32 to vector<8x128xf32>
    %15 = arith.subf %14, %13 : vector<8x128xf32>
    %cst_7 = arith.constant 0.000000e+00 : f32
    %16 = vector.broadcast %cst_7 : f32 to vector<8x128xf32>
    %17 = arith.maximumf %16, %15 : vector<8x128xf32>
    %18 = vector.broadcast %cst_7 : f32 to vector<8x128xf32>
    %19 = arith.subf %18, %15 : vector<8x128xf32>
    %20 = arith.cmpf one, %19, %19 : vector<8x128xf32>
    %21 = vector.broadcast %cst_7 : f32 to vector<8x128xf32>
    %22 = arith.addf %21, %15 : vector<8x128xf32>
    %23 = math.absf %19 : vector<8x128xf32>
    %cst_8 = arith.constant 0.000000e+00 : f32
    %24 = vector.broadcast %cst_8 : f32 to vector<8x128xf32>
    %25 = arith.subf %24, %23 : vector<8x128xf32>
    %26 = math.exp %25 : vector<8x128xf32>
    %27 = math.log1p %26 : vector<8x128xf32>
    %28 = arith.addf %17, %27 : vector<8x128xf32>
    %29 = arith.select %20, %22, %28 : vector<8x128xi1>, vector<8x128xf32>
    %30 = vector.broadcast %7 : f32 to vector<8x128xf32>
    %31 = arith.mulf %30, %13 : vector<8x128xf32>
    %32 = arith.subf %29, %31 : vector<8x128xf32>
    %33 = vector.broadcast %10 : f32 to vector<8x128xf32>
    %34 = arith.mulf %33, %11 : vector<8x128xf32>
    %35 = arith.subf %32, %34 : vector<8x128xf32>
    %c0_9 = arith.constant 0 : index
    %c0_10 = arith.constant 0 : index
    %36 = vector.load %arg5[%c0_9, %c0_10] : memref<8x128xf32, #tpu.memory_space<vmem>>, vector<8x128xf32>
    tpu.vector_store %arg5[%c0_9, %c0_10], %35 {strides = array<i32>} : memref<8x128xf32, #tpu.memory_space<vmem>>, vector<8x128xf32>,
    return
  }
  func.func @transform_0(%arg0: i32, %arg1: i32) -> i32 {
    %c0_i32 = arith.constant 0 : i32
    %c0_i32_0 = arith.constant 0 : i32
    return %c0_i32 : i32
  }
  func.func @transform_1(%arg0: i32, %arg1: i32) -> (i32, i32) {
    %c0_i32 = arith.constant 0 : i32
    return %arg0, %arg1 : i32, i32
  }
  func.func @transform_2(%arg0: i32, %arg1: i32) -> (i32, i32) {
    %c0_i32 = arith.constant 0 : i32
    return %arg0, %arg1 : i32, i32
  }
  func.func @transform_3(%arg0: i32, %arg1: i32) -> (i32, i32) {
    %c0_i32 = arith.constant 0 : i32
    return %arg0, %arg1 : i32, i32
  }
}

</mosaic_0001>

<bundles_post_ra>
// kernel: tpu_custom_call.1
= control target key start
LH: loop header
LB: loop body
LE: loop exit
PB: predicated region body
PF: predicated region fallthrough
CT: control target
= control target key end

     0   :  { %8 = vsyncpa [#allocation5], 0  ;;  %s246_s0 = inlined_call_operand.hbm [shape: f32[3], index: 0, kind: input, shape index: {}]   ;;  %s247_s1 = inlined_call_operand.hbm [shape: f32[8,128], index: 1, kind: input, shape index: {}]   ;;  %s248_s2 = inlined_call_operand.hbm [shape: f32[8,128], index: 2, kind: input, shape index: {}]   ;;  %s249_s3 = inlined_call_operand.hbm [shape: f32[8,128], index: 3, kind: output, shape index: {}]  }
   0x1   :  { %9 = vsyncpa [#allocation3], 0 }
   0x2   :  { %10 = vsyncpa [#allocation8], 0 }
   0x3   :  { %11 = vsyncpa [#allocation4], 0  ;;  %s200_s12 = smov [#allocation2]   ;;  %s201_s15 = smov [#allocation6]  }
   0x4   :  { %19 = dma.hbm_to_smem %s246_s0, 16, %s200_s12, [#allocation5]  }
   0x5   :  { %s26_s16 = sshll.u32 %s201_s15, 4  ;;  %s202_s17 = smov [#allocation7]   ;;  %s27_s16 = int_to_ptr.vmem [resolvable:$true] %s26_s16 }
   0x6   :  { %s36_s18 = sshll.u32 %s202_s17, 4  ;;  %s140_s19 = scalar_lea.vmem %s27_s16, 128  ;;  %s37_s18 = int_to_ptr.vmem [resolvable:$true] %s36_s18 }
   0x7   :  { %p141_p0 = scmp.ne.s32.totalorder %s27_s16, %s140_s19  ;;  %p145_p1 = scmp.lt.s32.totalorder %s27_s16, %s27_s16 }
   0x8   :  { %p146_p2 = scmp.lt.s32.totalorder %s140_s19, %s140_s19 }
   0xa   :  { %p147_p3 = por %p146_p2, %p145_p1 }
   0xc   :  { %p148_p4 = pnand %p147_p3, %p141_p0 }
   0xe   :  { %151 = shalt.err (!%p148_p4)
}
   0xf   :  { %29 = dma.hbm_to_vmem [thread:$0]  %s247_s1, 128, %s27_s16, [#allocation3]  }
  0x10   :  { %s160_s22 = scalar_lea.vmem %s37_s18, 128  ;;  %p165_p6 = scmp.lt.s32.totalorder %s37_s18, %s37_s18 }
  0x11   :  { %p161_p5 = scmp.ne.s32.totalorder %s37_s18, %s160_s22  ;;  %p166_p7 = scmp.lt.s32.totalorder %s160_s22, %s160_s22 }
  0x13   :  { %p167_p8 = por %p166_p7, %p165_p6 }
  0x15   :  { %p168_p9 = pnand %p167_p8, %p161_p5 }
  0x17   :  { %171 = shalt.err (!%p168_p9)
}
  0x18   :  { %39 = dma.hbm_to_vmem [thread:$0]  %s248_s2, 128, %s37_s18, [#allocation8]  }
  0x19   :  { %192 = dma.done.wait [#allocation5], 16  }
  0x1a   :  { %193 = vsyncadd [#allocation5], 4294967280 }
  0x1b   :  { %194 = dma.done.wait [#allocation3], 128  }
  0x1c   :  { %195 = vsyncadd [#allocation3], 4294967168 }
  0x1d   :  { %196 = dma.done.wait [#allocation8], 128  }
  0x1e   :  { %197 = vsyncadd [#allocation8], 4294967168 }
  0x1f   :  { %49 = sfence }
  0x20   :  { %s233_s1 = sld [smem:[#allocation2 + $0x1]]  ;;  %v63_v0 = vld [vmem:[#allocation6] sm:$0xff]  ;;  %v64_v1 = vld [vmem:[#allocation7] sm:$0xff]  ;;  %s203_s6 = smov [#allocation9]  }
  0x21   :  { %s235_s24 = sld [smem:[#allocation2 + $0x2]]  ;;  %v65_v2 = vmul.f32 %v64_v1, %v63_v0  ;;  %s99_s7 = sshll.u32 %s203_s6, 4  ;;  %s100_s7 = int_to_ptr.vmem [resolvable:$true] %s99_s7 }
  0x22   :  { %s172_s8 = scalar_lea.vmem %s100_s7, 128  ;;  %p177_p11 = scmp.lt.s32.totalorder %s100_s7, %s100_s7 }
  0x23   :  { %v66_v4 = vsub.f32 0.0, %v65_v2  ;;  %p173_p10 = scmp.ne.s32.totalorder %s100_s7, %s172_s8  ;;  %p178_p12 = scmp.lt.s32.totalorder %s172_s8, %s172_s8 }
  0x25   :  { %v68_v5 = vsub.f32 0.0, %v66_v4  ;;  %v67_v18 = vmax.f32 %v66_v4, 0.0  ;;  %p179_p13 = por %p178_p12, %p177_p11 }
  0x27   :  { %s52_s2 = ssub.f32 1.0, %s235_s24  ;;  %v71_v6 = vand.u32 2147483647, %v68_v5  ;;  %vm69_vm1 = vcmp.ne.f32.partialorder %v68_v5, %v68_v5  ;;  %p180_p0 = pnand %p179_p13, %p173_p10 }
  0x28   :  { %s57_s25 = sadd.f32 %s235_s24, %s233_s1 }
  0x29   :  { %s53_s26 = ssub.f32 %s52_s2, %s233_s1  ;;  %v72_v7 = vsub.f32 0.0, %v71_v6 }
  0x2a   :  { %s60_s27 = ssub.f32 %s233_s1, %s235_s24  ;;  %s58_s28 = smul.f32 0.5, %s57_s25 }
  0x2b   :  { %v54_v3 = vstv %s53_s26  ;;  %v73_v9 = vmul.f32 1.442695, %v72_v7 }
  0x2c   :  { %118 = vrcp.f32 %v54_v3  ;;  %s61_s29 = smul.f32 0.5, %s60_s27 }
  0x2d   :  { %120 = vpow2.f32 %v73_v9 }
  0x39   :  { %v119_v8 = vpop.eup %118 }
  0x3a   :  { %112 = vpush %v119_v8  ;;  %v121_v10 = vpop.eup %120 }
  0x3b   :  { %v75_v11 = vadd.f32 1.0, %v121_v10  ;;  %v78_v12 = vmul.f32 -0.5, %v121_v10  ;;  %v81_v15 = vand.u32 2147483647, %v121_v10 }
  0x3d   :  { %122 = vlog2.f32 %v75_v11  ;;  %v79_v13 = vadd.f32 1.0, %v78_v12  ;;  %vm82_vm0 = vcmp.lt.f32.partialorder %v81_v15, 0.0004427343 }
  0x3f   :  { %v80_v17 = vmul.f32 %v121_v10, %v79_v13 }
  0x4a   :  { %v123_v14 = vpop.eup %122 }
  0x4b   :  { %v77_v16 = vmul.f32 0.6931472, %v123_v14 }
  0x4d   :  { %v83_v19 = vsel %vm82_vm0, %v80_v17, %v77_v16 }
  0x4e   :  { %v84_v20 = vadd.f32 %v83_v19, %v67_v18 }
  0x50   :  { %v85_v22 = vsel %vm69_vm1, %v66_v4, %v84_v20 }
  0x6b   :  { %s113_s30 = spop %112 }
  0x6c   :  { %s59_s4 = smul.f32 %s113_s30, %s58_s28 }
  0x6d   :  { %s62_s5 = smul.f32 %s113_s30, %s61_s29 }
  0x6e   :  { %v86_v21 = vstv %s59_s4 }
  0x6f   :  { %v87_v23 = vmul.f32 %v86_v21, %v65_v2  ;;  %v89_v24 = vstv %s62_s5 }
  0x70   :  { %v90_v25 = vmul.f32 %v89_v24, %v63_v0 }
  0x71   :  { %v88_v26 = vsub.f32 %v85_v22, %v87_v23 }
  0x73   :  { %v91_v27 = vsub.f32 %v88_v26, %v90_v25 }
  0x75   :  { %92 = vst [vmem:[#allocation9] sm:$0xff] %v91_v27 }
  0x76   :  { %183 = shalt.err (!%p180_p0)
}
  0x77   :  { %102 = dma.vmem_to_hbm [thread:$0]  %s100_s7, 128, %s249_s3, [#allocation4]  }
  0x78   :  { %198 = dma.done.wait [#allocation4], 128  }
  0x79   :  { %199 = vsyncadd [#allocation4], 4294967168 }
  0x7a   :  { %106 = vsyncpa [#allocation3], 1 }
  0x7b   :  { %107 = vsyncpa [#allocation8], 1 }
  0x7c   :  { %108 = vsyncpa [#allocation4], 1 }
  0x7d   :  { %109 = vsyncpa [#allocation5], 1 }

</bundles_post_ra>
